<compile_context>
chip_gen: v7x
topology: tpu7x:2x2x1
jax: 0.10.0
libtpu: 0.0.40
codegen_flags: <defaults>
</compile_context>

<pallas_src>
import functools

import jax
import jax.numpy as jnp
from jax.experimental import pallas as pl
from jax.experimental.pallas import tpu as pltpu


# ----------------------------------------------------------------------------
# Pallas kernel: fused 3-layer MLP forward for one batch tile (batch on lanes).
# ----------------------------------------------------------------------------
def pinn_mlp_kernel(x_ref, w1_ref, b1_ref, w2_ref, b2_ref, w3_ref, b3_ref,
                    o_ref):
    # x_ref : (2, TN)   batch points on the lane axis (f32)
    # w1_ref: (H, 2)    b1_ref: (H, 1)                (f32)
    # w2_ref: (H, H)    f32 or bf16 (pre-packed)      b2_ref: (H, 1) f32
    # w3_ref: (H, 1)    b3_ref: (1,) scalar in SMEM   (f32)
    # o_ref : (1, TN)   lane-dense output block       (f32)
    x0 = x_ref[0:1, :]                               # (1, TN)
    x1 = x_ref[1:2, :]                               # (1, TN)

    # Layer 1 (K=2 contraction): VPU broadcast multiply-adds, no MXU.
    h1 = jnp.tanh(w1_ref[:, 0:1] * x0
                  + w1_ref[:, 1:2] * x1
                  + b1_ref[...])                     # (H, TN) f32

    # Layer 2 (H x H): MXU matmul, lane-dense result, f32 accumulate.
    # Operand dtype follows the pre-packed W2 (f32 or bf16).
    h2 = jnp.tanh(
        jnp.dot(w2_ref[...], h1.astype(w2_ref.dtype),
                preferred_element_type=jnp.float32)
        + b2_ref[...])                               # (H, TN) f32

    # Layer 3 (out_dim=1): VPU multiply + XLU sublane reduce, lane-dense.
    y = jnp.sum(w3_ref[...] * h2, axis=0, keepdims=True) + b3_ref[0]  # (1, TN)
    o_ref[...] = y.astype(o_ref.dtype)


# ----------------------------------------------------------------------------
# One-time parameter packing (hoisted out of the per-call hot path).
# ----------------------------------------------------------------------------
def pack_params(params, *, mxu_bf16=False):
    """Re-layout (and optionally bf16-cast) parameters once, at init time."""
    w1, b1, w2, b2, w3, b3 = params
    hidden = w1.shape[1]
    w2t = w2.T
    if mxu_bf16:
        w2t = w2t.astype(jnp.bfloat16)               # MXU operands only
    packed = (
        jnp.asarray(w1.T),                           # (H, 2)
        jnp.asarray(b1).reshape(hidden, 1),          # (H, 1)
        jnp.asarray(w2t),                            # (H, H)  f32 or bf16
        jnp.asarray(b2).reshape(hidden, 1),          # (H, 1)
        jnp.asarray(w3).reshape(hidden, 1),          # (H, 1)
        jnp.asarray(b3).reshape((1,)),               # (1,) scalar -> SMEM
    )
    return jax.tree_util.tree_map(jax.device_put, packed)


def _pick_tile_n(n):
    # Target ~8 tiles (>= 2 per v7x TensorCore) while amortizing per-step
    # overhead; clamp to [512, 4096].  VMEM stays tiny at every setting.
    return int(min(4096, max(512, pl.next_power_of_2(pl.cdiv(n, 8)))))


# ----------------------------------------------------------------------------
# Wrapper: tile over the batch axis (already on lanes: x comes in as (2, N)).
# ----------------------------------------------------------------------------
@functools.partial(jax.jit, static_argnames=("tile_n",))
def pinn_forward(xt, packed_params, *, tile_n=None):
    """Forward pass.  xt has shape (2, N): collocation points, batch on lanes.

    Returns (N, 1), matching the PyTorch module's network(x) output.
    """
    w1t, b1c, w2t, b2c, w3c, b3s = packed_params
    in_dim, n = xt.shape
    hidden = w1t.shape[0]

    if tile_n is None:
        tile_n = _pick_tile_n(n)

    # Round the batch up to a multiple of tile_n; tail columns are discarded.
    n_tiles = pl.cdiv(n, tile_n)
    n_pad = n_tiles * tile_n
    if n_pad != n:
        xt = jnp.pad(xt, ((0, 0), (0, n_pad - n)))

    full = lambda i: (0, 0)              # weights: same block every grid step

    out = pl.pallas_call(
        pinn_mlp_kernel,
        out_shape=jax.ShapeDtypeStruct((1, n_pad), jnp.float32),
        grid_spec=pltpu.PrefetchScalarGridSpec(
            num_scalar_prefetch=0,
            grid=(n_tiles,),
            in_specs=[
                pl.BlockSpec((in_dim, tile_n), lambda i: (0, i)),   # x^T tile
                pl.BlockSpec((hidden, in_dim), full),               # W1^T
                pl.BlockSpec((hidden, 1), full),                    # b1
                pl.BlockSpec((hidden, hidden), full),               # W2^T
                pl.BlockSpec((hidden, 1), full),                    # b2
                pl.BlockSpec((hidden, 1), full),                    # W3
                pl.BlockSpec(memory_space=pltpu.MemorySpace.SMEM),  # b3 scalar
            ],
            out_specs=pl.BlockSpec((1, tile_n), lambda i: (0, i)),
        ),
        compiler_params=pltpu.CompilerParams(
            dimension_semantics=("parallel",)),
    )(xt, w1t, b1c, w2t, b2c, w3c, b3s)

    return out[0, :n].reshape(n, 1)


# ----------------------------------------------------------------------------
# Deterministic parameter initialization (synthetic; no checkpoint loading).
# ----------------------------------------------------------------------------
def init_params(key, in_dim=2, hidden=32, out_dim=1):
    k1, k2, k3, k4, k5, k6 = jax.random.split(key, 6)

    # PyTorch-nn.Linear-style uniform(-1/sqrt(fan_in), 1/sqrt(fan_in)) init.
    def lin(kw, kb, fan_in, fan_out):
        bound = 1.0 / jnp.sqrt(jnp.float32(fan_in))
        w = jax.random.uniform(kw, (fan_in, fan_out), jnp.float32,
                               minval=-bound, maxval=bound)
        b = jax.random.uniform(kb, (1, fan_out), jnp.float32,
                               minval=-bound, maxval=bound)
        return w, b

    w1, b1 = lin(k1, k2, in_dim, hidden)
    w2, b2 = lin(k3, k4, hidden, hidden)
    w3, b3 = lin(k5, k6, hidden, out_dim)
    return (w1, b1, w2, b2, w3, b3)


def reference_forward(x, params):
    w1, b1, w2, b2, w3, b3 = params
    h1 = jnp.tanh(x @ w1 + b1)
    h2 = jnp.tanh(h1 @ w2 + b2)
    return h2 @ w3 + b3


if __name__ == "__main__":
    key = jax.random.PRNGKey(0)
    kx, kp = jax.random.split(key)

    # Collocation-style points in [-3, 3]^2, generated directly in the
    # (2, N) lane-major layout the kernel consumes (no wrapper-side x.T).
    # N is not a multiple of tile_n on purpose (exercises the padded tail);
    # the auto-picked tile_n=512 gives a 2-step "parallel" grid so both v7x
    # TensorCores get work at this small demo size.
    N, HIDDEN = 1000, 32
    xt = 6.0 * jax.random.uniform(kx, (2, N), jnp.float32) - 3.0
    params = init_params(kp, in_dim=2, hidden=HIDDEN, out_dim=1)
    ref = reference_forward(xt.T, params)

    # f32 datapath (portable default; matches the PyTorch f32 semantics).
    packed_f32 = pack_params(params)
    out = jax.block_until_ready(pinn_forward(xt, packed_f32))
    assert out.shape == (N, 1)
    assert jnp.allclose(out, ref, atol=1e-4, rtol=1e-4), "f32 mismatch vs ref"

    # bf16 MXU-operand path (f32 accumulate, f32 tanh): ~3x fewer MXU passes
    # on v6e/v7x; validated against a bf16-appropriate tolerance.
    packed_bf16 = pack_params(params, mxu_bf16=True)
    out_bf16 = jax.block_until_ready(pinn_forward(xt, packed_bf16))
    assert out_bf16.shape == (N, 1)
    assert float(jnp.max(jnp.abs(out_bf16 - ref))) < 5e-2, "bf16 mismatch vs ref"

    print("KERNEL_OK")
</pallas_src>

<mosaic_0001>
module attributes {stable_mosaic.version = 11 : i64} {
  func.func @pinn_mlp_kernel(%arg0: i32, %arg1: memref<2x512xf32, #tpu.memory_space<vmem>>, %arg2: memref<32x2xf32, #tpu.memory_space<vmem>>, %arg3: memref<32x1xf32, #tpu.memory_space<vmem>>, %arg4: memref<32x32xf32, #tpu.memory_space<vmem>>, %arg5: memref<32x1xf32, #tpu.memory_space<vmem>>, %arg6: memref<32x1xf32, #tpu.memory_space<vmem>>, %arg7: memref<1xf32, #tpu.memory_space<smem>>, %arg8: memref<1x512xf32, #tpu.memory_space<vmem>>) attributes {dimension_semantics = [#tpu.dimension_semantics<parallel>], iteration_bounds = array<i64: 2>, scalar_prefetch = 0 : i64, scratch_operands = 0 : i64, tpu.core_type = #tpu.core_type<tc>, window_params = [{transform_indices = @transform_0, window_bounds = array<i64: 2, 512>}, {pipeline_mode = #tpu.pipeline_mode<synchronous>, transform_indices = @transform_1, window_bounds = array<i64: 32, 2>}, {pipeline_mode = #tpu.pipeline_mode<synchronous>, transform_indices = @transform_2, window_bounds = array<i64: 32, 1>}, {pipeline_mode = #tpu.pipeline_mode<synchronous>, transform_indices = @transform_3, window_bounds = array<i64: 32, 32>}, {pipeline_mode = #tpu.pipeline_mode<synchronous>, transform_indices = @transform_4, window_bounds = array<i64: 32, 1>}, {pipeline_mode = #tpu.pipeline_mode<synchronous>, transform_indices = @transform_5, window_bounds = array<i64: 32, 1>}, {transform_indices = @transform_6, window_bounds = array<i64: 1>}, {transform_indices = @transform_7, window_bounds = array<i64: 1, 512>}]} {
    %c0 = arith.constant 0 : index
    %c0_0 = arith.constant 0 : index
    %0 = vector.load %arg1[%c0, %c0_0] : memref<2x512xf32, #tpu.memory_space<vmem>>, vector<1x512xf32>
    %c1 = arith.constant 1 : index
    %c0_1 = arith.constant 0 : index
    %1 = vector.load %arg1[%c1, %c0_1] : memref<2x512xf32, #tpu.memory_space<vmem>>, vector<1x512xf32>
    %c0_2 = arith.constant 0 : index
    %c0_3 = arith.constant 0 : index
    %2 = vector.load %arg2[%c0_2, %c0_3] : memref<32x2xf32, #tpu.memory_space<vmem>>, vector<32x1xf32>
    %3 = vector.broadcast %2 : vector<32x1xf32> to vector<32x512xf32>
    %4 = vector.broadcast %0 : vector<1x512xf32> to vector<32x512xf32>
    %5 = arith.mulf %3, %4 : vector<32x512xf32>
    %c0_4 = arith.constant 0 : index
    %c1_5 = arith.constant 1 : index
    %6 = vector.load %arg2[%c0_4, %c1_5] : memref<32x2xf32, #tpu.memory_space<vmem>>, vector<32x1xf32>
    %7 = vector.broadcast %6 : vector<32x1xf32> to vector<32x512xf32>
    %8 = vector.broadcast %1 : vector<1x512xf32> to vector<32x512xf32>
    %9 = arith.mulf %7, %8 : vector<32x512xf32>
    %10 = arith.addf %5, %9 : vector<32x512xf32>
    %c0_6 = arith.constant 0 : index
    %c0_7 = arith.constant 0 : index
    %11 = vector.load %arg3[%c0_6, %c0_7] : memref<32x1xf32, #tpu.memory_space<vmem>>, vector<32x1xf32>
    %12 = vector.broadcast %11 : vector<32x1xf32> to vector<32x512xf32>
    %13 = arith.addf %10, %12 : vector<32x512xf32>
    %14 = math.tanh %13 : vector<32x512xf32>
    %c0_8 = arith.constant 0 : index
    %c0_9 = arith.constant 0 : index
    %15 = vector.load %arg4[%c0_8, %c0_9] : memref<32x32xf32, #tpu.memory_space<vmem>>, vector<32x32xf32>
    %cst = arith.constant dense<0.000000e+00> : vector<32x512xf32>
    %16 = tpu.matmul %15, %14, %cst {dimension_numbers = #tpu.dot_dimension_numbers<[1], [0], [0], [1], [0, 0, 1, 1], [], []>} : vector<32x32xf32>, vector<32x512xf32>, vector<32x512xf32> -> vector<32x512xf32>
    %c0_10 = arith.constant 0 : index
    %c0_11 = arith.constant 0 : index
    %17 = vector.load %arg5[%c0_10, %c0_11] : memref<32x1xf32, #tpu.memory_space<vmem>>, vector<32x1xf32>
    %18 = vector.broadcast %17 : vector<32x1xf32> to vector<32x512xf32>
    %19 = arith.addf %16, %18 : vector<32x512xf32>
    %20 = math.tanh %19 : vector<32x512xf32>
    %c0_12 = arith.constant 0 : index
    %c0_13 = arith.constant 0 : index
    %21 = vector.load %arg6[%c0_12, %c0_13] : memref<32x1xf32, #tpu.memory_space<vmem>>, vector<32x1xf32>
    %22 = vector.broadcast %21 : vector<32x1xf32> to vector<32x512xf32>
    %23 = arith.mulf %22, %20 : vector<32x512xf32>
    %cst_14 = arith.constant dense<0.000000e+00> : vector<512xf32>
    %24 = vector.multi_reduction <add>, %23, %cst_14 [0] : vector<32x512xf32> to vector<512xf32>
    %25 = vector.shape_cast %24 : vector<512xf32> to vector<1x512xf32>
    %c0_15 = arith.constant 0 : index
    %26 = memref.load %arg7[%c0_15] : memref<1xf32, #tpu.memory_space<smem>>
    %27 = vector.broadcast %26 : f32 to vector<1x512xf32>
    %28 = arith.addf %25, %27 : vector<1x512xf32>
    %c0_16 = arith.constant 0 : index
    %c0_17 = arith.constant 0 : index
    %29 = vector.load %arg8[%c0_16, %c0_17] : memref<1x512xf32, #tpu.memory_space<vmem>>, vector<1x512xf32>
    tpu.vector_store %arg8[%c0_16, %c0_17], %28 {strides = array<i32>} : memref<1x512xf32, #tpu.memory_space<vmem>>, vector<1x512xf32>,
    return
  }
  func.func @transform_0(%arg0: i32) -> (i32, i32) {
    %c0_i32 = arith.constant 0 : i32
    %c0_i32_0 = arith.constant 0 : i32
    return %c0_i32, %arg0 : i32, i32
  }
  func.func @transform_1(%arg0: i32) -> (i32, i32) {
    %c0_i32 = arith.constant 0 : i32
    %c0_i32_0 = arith.constant 0 : i32
    %c0_i32_1 = arith.constant 0 : i32
    return %c0_i32, %c0_i32_0 : i32, i32
  }
  func.func @transform_2(%arg0: i32) -> (i32, i32) {
    %c0_i32 = arith.constant 0 : i32
    %c0_i32_0 = arith.constant 0 : i32
    %c0_i32_1 = arith.constant 0 : i32
    return %c0_i32, %c0_i32_0 : i32, i32
  }
  func.func @transform_3(%arg0: i32) -> (i32, i32) {
    %c0_i32 = arith.constant 0 : i32
    %c0_i32_0 = arith.constant 0 : i32
    %c0_i32_1 = arith.constant 0 : i32
    return %c0_i32, %c0_i32_0 : i32, i32
  }
  func.func @transform_4(%arg0: i32) -> (i32, i32) {
    %c0_i32 = arith.constant 0 : i32
    %c0_i32_0 = arith.constant 0 : i32
    %c0_i32_1 = arith.constant 0 : i32
    return %c0_i32, %c0_i32_0 : i32, i32
  }
  func.func @transform_5(%arg0: i32) -> (i32, i32) {
    %c0_i32 = arith.constant 0 : i32
    %c0_i32_0 = arith.constant 0 : i32
    %c0_i32_1 = arith.constant 0 : i32
    return %c0_i32, %c0_i32_0 : i32, i32
  }
  func.func @transform_6(%arg0: i32) -> i32 {
    %c0_i32 = arith.constant 0 : i32
    %c0_i32_0 = arith.constant 0 : i32
    return %c0_i32 : i32
  }
  func.func @transform_7(%arg0: i32) -> (i32, i32) {
    %c0_i32 = arith.constant 0 : i32
    %c0_i32_0 = arith.constant 0 : i32
    return %c0_i32, %arg0 : i32, i32
  }
}

</mosaic_0001>

<bundles_post_ra>
// kernel: pinn_forward.1
= control target key start
LH: loop header
LB: loop body
LE: loop exit
PB: predicated region body
PF: predicated region fallthrough
CT: control target
= control target key end

     0   :  { %s1043_s26 = smov 0   ;;  %s1181_s0 = inlined_call_operand.vmem [shape: f32[2,1024], index: 0, kind: input, shape index: {}]   ;;  %s1182_s1 = inlined_call_operand.vmem [shape: f32[32,2], index: 1, kind: input, shape index: {}]   ;;  %s1183_s2 = inlined_call_operand.vmem [shape: f32[32,1], index: 2, kind: input, shape index: {}]   ;;  %s1184_s3 = inlined_call_operand.vmem [shape: f32[32,32], index: 3, kind: input, shape index: {}]   ;;  %s1185_s4 = inlined_call_operand.vmem [shape: f32[32,1], index: 4, kind: input, shape index: {}]   ;;  %s1186_s5 = inlined_call_operand.vmem [shape: f32[32,1], index: 5, kind: input, shape index: {}]   ;;  %s1187_s6 = inlined_call_operand.<no memory space> [shape: f32[1], index: 6, kind: input, shape index: {}]   ;;  %s1188_s7 = inlined_call_operand.vmem [shape: f32[1,1024], index: 7, kind: output, shape index: {}]  }
   0x1   :  { %12 = sst [smem:[#allocation2]] %s1187_s6 }
   0x2 LB: > { %s871_s27 = sadd.s32 4294967295, %s994_s26   ;;  %p875_p0 = scmp.ge.s32.totalorder %s994_s26, 1  ;;  %s994_s26 = sphi %s1043_s26, %s18_s26  }
   0x3   : > { %p239_p1 = scmp.lt.s32.totalorder %s994_s26, 3 }
   0x5   : > { %p240_p2 = pnand %p875_p0, %p239_p1 }
   0x6   : > { %v286_v0 = vld [vmem:[%s1182_s1 + $0x10] sm:$0xff] (!%p240_p2)  ;;  %v284_v1 = vld [vmem:[%s1182_s1] sm:$0xff] (!%p240_p2)  ;;  %v996_v2 = vmov (!%p240_p2), 1   ;;  %v285_v3 = vld [vmem:[%s1182_s1 + $0x8] sm:$0xff] (!%p240_p2)  ;;  %v997_v4 = vmov (!%p240_p2), 0   ;;  %v998_v18 = vmov (!%p240_p2), 0.0   ;;  %v309_v19 = vlaneseq (!%p240_p2) }
   0x7   : > { %243 = sbr.rel (%p240_p2) target bundleno = 452 (0x1c4), region = 48  ;;  %920 = vset.pattern.permute.xlu0 (!%p240_p2), %v996_v2  ;;  %918 = vset.pattern.permute.xlu1 (!%p240_p2), %v996_v2  ;;  %v287_v5 = vld [vmem:[%s1182_s1 + $0x18] sm:$0xff] (!%p240_p2)  ;;  %v415_v6 = vld [vmem:[%s1183_s2 + $0x8] sm:$0xff] (!%p240_p2)  ;;  %v414_v7 = vld [vmem:[%s1183_s2] sm:$0xff] (!%p240_p2)  ;;  %s876_s14 = sshll.u32 (!%p240_p2), %s871_s27, 2  ;;  %vm498_vm0 = vcmask (!%p240_p2), 261120  }
   0x8   : > { %354 = vperm.xlu0 (!%p240_p2), %920, %v286_v0   ;;  %346 = vperm.xlu1 (!%p240_p2), %918, %v284_v1   ;;  %v474_v8 = vld [vmem:[%s1185_s4] sm:$0xff] (!%p240_p2)  ;;  %v416_v9 = vld [vmem:[%s1183_s2 + $0x10] sm:$0xff] (!%p240_p2)  ;;  %v417_v11 = vld [vmem:[%s1183_s2 + $0x18] sm:$0xff] (!%p240_p2)  ;;  %p271_p3 = scmp.lt.s32.totalorder (!%p240_p2), %s876_s14, 7  ;;  %v1107_v20 = vshrl.u32 (!%p240_p2), %v309_v19, 7  ;;  %s781_s28 = sld [smem:[#allocation2]] (!%p240_p2) }
   0x9   : > { %v476_v10 = vld [vmem:[%s1185_s4 + $0x10] sm:$0xff] (!%p240_p2)  ;;  %v705_v12 = vld [vmem:[%s1186_s5] sm:$0xff] (!%p240_p2)  ;;  %v475_v13 = vld [vmem:[%s1185_s4 + $0x8] sm:$0xff] (!%p240_p2)  ;;  %575 = vmatprep.mubr.f32.mxu0 (!%p240_p2), %v998_v18  ;;  %664 = vmatprep.mubr.f32.mxu1 (!%p240_p2), %v998_v18  ;;  %vm818_vm1 = vcmp.lt.s32.totalorder (!%p240_p2), %v309_v19, 512 }
   0xa   : > { %v707_v14 = vld [vmem:[%s1186_s5 + $0x10] sm:$0xff] (!%p240_p2)  ;;  %v477_v15 = vld [vmem:[%s1185_s4 + $0x18] sm:$0xff] (!%p240_p2)  ;;  %v706_v16 = vld [vmem:[%s1186_s5 + $0x8] sm:$0xff] (!%p240_p2)  ;;  %v311_v23 = vsub.s32 (!%p240_p2), 0, %v1107_v20  ;;  %v315_v24 = vsub.s32 (!%p240_p2), 1, %v1107_v20  ;;  %v319_v25 = vsub.s32 (!%p240_p2), 2, %v1107_v20 }
   0xb   : > { %v708_v17 = vld [vmem:[%s1186_s5 + $0x18] sm:$0xff] (!%p240_p2)  ;;  %v323_v28 = vsub.s32 (!%p240_p2), 3, %v1107_v20 }
   0xc   : > { %921 = vset.pattern.permute.xlu0 (!%p240_p2), %v997_v4  ;;  %350 = vperm.xlu1 (!%p240_p2), %918, %v285_v3  }
   0xd   : > { %290 = vperm.xlu0 (!%p240_p2), %921, %v284_v1  }
   0xe   : > { %s1190_s14 = smov (!%p271_p3, %s876_s14), 7 }
   0xf   : > { %s877_s15 = sshll.u32 %s1190_s14, 1  ;;  %s279_s30 = scalar_lea.vmem %s1188_s7, %s1190_s14 }
  0x10   : > { %919 = vset.pattern.permute.xlu1 %v997_v4  ;;  %s274_s18 = scalar_lea.vmem %s1181_s0, %s877_s15 }
  0x11   : > { %295 = vperm.xlu0 %921, %v285_v3   ;;  %305 = vperm.xlu1 %919, %v287_v5   ;;  %v879_v26 = vld [vmem:[%s274_s18 + $0x1] ss:$2 sm:$0xf]  ;;  %v281_v30 = vld [vmem:[%s274_s18] ss:$2 sm:$0xf] }
  0x12   : > { %v365_v31 = vrot.slane %v879_v26, %v311_v23  ;;  %v369_v32 = vrot.slane %v879_v26, %v315_v24  ;;  %v1116_v33 = vrot.slane %v879_v26, %v319_v25  ;;  %v1118_v34 = vrot.slane %v879_v26, %v323_v28 }
  0x13   : > { %v312_v35 = vrot.slane %v281_v30, %v311_v23  ;;  %v316_v36 = vrot.slane %v281_v30, %v315_v24  ;;  %v1122_v39 = vrot.slane %v281_v30, %v319_v25  ;;  %v1124_v42 = vrot.slane %v281_v30, %v323_v28 }
  0x15   : > { %300 = vperm.xlu0 %921, %v286_v0   ;;  %922 = vset.pattern.permute.xlu1 %v996_v2 }
  0x16   : > { %358 = vperm.xlu1 %922, %v287_v5  }
  0x19   : > { %425 = vperm.xlu0 %921, %v415_v6  }
  0x1a   : > { %923 = vset.pattern.permute.xlu1 %v997_v4 }
  0x1b   : > { %420 = vperm.xlu1 %923, %v414_v7  }
  0x1d   : > { %480 = vperm.xlu0 %921, %v474_v8  }
  0x1f   : > { %430 = vperm.xlu1 %923, %v416_v9  }
  0x21   : > { %490 = vperm.xlu0 %921, %v476_v10  }
  0x23   : > { %435 = vperm.xlu1 %923, %v417_v11  }
  0x25   : > { %711 = vperm.xlu0 %921, %v705_v12  }
  0x27   : > { %485 = vperm.xlu1 %923, %v475_v13  }
  0x29   : > { %721 = vperm.xlu0 %921, %v707_v14  }
  0x2b   : > { %495 = vperm.xlu1 %923, %v477_v15  }
  0x2f   : > { %716 = vperm.xlu1 %923, %v706_v16  }
  0x33   : > { %726 = vperm.xlu1 %923, %v708_v17  }
  0x87   : > { %v347_v21 = vpop.permute.xlu1 %346  ;;  %v355_v22 = vpop.permute.xlu0 %354 }
  0x88   : > { %v382_v40 = vmul.f32 %v365_v31, %v347_v21  ;;  %v383_v41 = vmul.f32 %v369_v32, %v347_v21  ;;  %v384_v43 = vmul.f32 %v1116_v33, %v347_v21  ;;  %v385_v47 = vmul.f32 %v1118_v34, %v347_v21 }
  0x89   : > { %v390_v52 = vmul.f32 %v365_v31, %v355_v22  ;;  %v391_v57 = vmul.f32 %v369_v32, %v355_v22  ;;  %v392_v61 = vmul.f32 %v1116_v33, %v355_v22  ;;  %v393_v1 = vmul.f32 %v1118_v34, %v355_v22 }
  0x8b   : > { %v351_v27 = vpop.permute.xlu1 %350 }
  0x8c   : > { %v291_v29 = vpop.permute.xlu0 %290  ;;  %v386_v53 = vmul.f32 %v365_v31, %v351_v27  ;;  %v387_v54 = vmul.f32 %v369_v32, %v351_v27  ;;  %v388_v55 = vmul.f32 %v1116_v33, %v351_v27  ;;  %v389_v58 = vmul.f32 %v1118_v34, %v351_v27 }
  0x8d   : > { %v329_v48 = vmul.f32 %v312_v35, %v291_v29  ;;  %v330_v49 = vmul.f32 %v316_v36, %v291_v29  ;;  %v331_v59 = vmul.f32 %v1122_v39, %v291_v29  ;;  %v332_v60 = vmul.f32 %v1124_v42, %v291_v29 }
  0x8f   : > { %v398_v4 = vadd.f32 %v382_v40, %v329_v48  ;;  %v399_v5 = vadd.f32 %v383_v41, %v330_v49  ;;  %v400_v13 = vadd.f32 %v384_v43, %v331_v59  ;;  %v401_v14 = vadd.f32 %v385_v47, %v332_v60 }
  0x90   : > { %v296_v37 = vpop.permute.xlu0 %295  ;;  %v1120_v38 = vpop.permute.xlu1 %305 }
  0x91   : > { %v333_v44 = vmul.f32 %v312_v35, %v296_v37  ;;  %v334_v45 = vmul.f32 %v316_v36, %v296_v37  ;;  %v335_v46 = vmul.f32 %v1122_v39, %v296_v37  ;;  %v336_v50 = vmul.f32 %v1124_v42, %v296_v37 }
  0x92   : > { %v341_v15 = vmul.f32 %v312_v35, %v1120_v38  ;;  %v342_v21 = vmul.f32 %v316_v36, %v1120_v38 }
  0x93   : > { %v402_v62 = vadd.f32 %v386_v53, %v333_v44  ;;  %v403_v63 = vadd.f32 %v387_v54, %v334_v45  ;;  %v404_v0 = vadd.f32 %v388_v55, %v335_v46  ;;  %v405_v3 = vadd.f32 %v389_v58, %v336_v50 }
  0x94   : > { %v301_v51 = vpop.permute.xlu0 %300  ;;  %v344_v45 = vmul.f32 %v1124_v42, %v1120_v38 }
  0x95   : > { %v359_v56 = vpop.permute.xlu1 %358  ;;  %v337_v6 = vmul.f32 %v312_v35, %v301_v51  ;;  %v338_v10 = vmul.f32 %v316_v36, %v301_v51  ;;  %v339_v16 = vmul.f32 %v1122_v39, %v301_v51  ;;  %v340_v22 = vmul.f32 %v1124_v42, %v301_v51 }
  0x96   : > { %v394_v24 = vmul.f32 %v365_v31, %v359_v56  ;;  %v395_v27 = vmul.f32 %v369_v32, %v359_v56  ;;  %v396_v35 = vmul.f32 %v1116_v33, %v359_v56  ;;  %v397_v36 = vmul.f32 %v1118_v34, %v359_v56 }
  0x97   : > { %v406_v26 = vadd.f32 %v390_v52, %v337_v6  ;;  %v407_v30 = vadd.f32 %v391_v57, %v338_v10  ;;  %v408_v37 = vadd.f32 %v392_v61, %v339_v16  ;;  %v409_v41 = vadd.f32 %v393_v1, %v340_v22  ;;  %v470_v10 = vld [vmem:[%s1184_s3] sm:$0xff] }
  0x98   : > { %v426_v2 = vpop.permute.xlu0 %425  ;;  %v343_v31 = vmul.f32 %v1122_v39, %v1120_v38  ;;  %v410_v32 = vadd.f32 %v394_v24, %v341_v15  ;;  %v411_v47 = vadd.f32 %v395_v27, %v342_v21  ;;  %v413_v34 = vadd.f32 %v397_v36, %v344_v45 }
  0x99   : > { %v442_v7 = vadd.f32 %v426_v2, %v402_v62  ;;  %v443_v8 = vadd.f32 %v426_v2, %v403_v63  ;;  %v444_v9 = vadd.f32 %v426_v2, %v404_v0  ;;  %v445_v11 = vadd.f32 %v426_v2, %v405_v3 }
  0x9a   : > { %v421_v12 = vpop.permute.xlu1 %420  ;;  %v412_v48 = vadd.f32 %v396_v35, %v343_v31 }
  0x9b   : > { %924 = vtanh.f32 %v442_v7  ;;  %v438_v17 = vadd.f32 %v421_v12, %v398_v4  ;;  %v439_v23 = vadd.f32 %v421_v12, %v399_v5  ;;  %v440_v25 = vadd.f32 %v421_v12, %v400_v13  ;;  %v473_v13 = vld [vmem:[%s1184_s3 + $0x18] sm:$0xff] }
  0x9c   : > { %926 = vtanh.f32 %v443_v8  ;;  %v441_v28 = vadd.f32 %v421_v12, %v401_v14  ;;  %v472_v12 = vld [vmem:[%s1184_s3 + $0x10] sm:$0xff]  ;;  %v481_v14 = vpop.permute.xlu0 %480 }
  0x9d   : > { %928 = vtanh.f32 %v444_v9 }
  0x9e   : > { %930 = vtanh.f32 %v445_v11  ;;  %v431_v29 = vpop.permute.xlu1 %430  ;;  %v471_v11 = vld [vmem:[%s1184_s3 + $0x8] sm:$0xff] }
  0x9f   : > { %932 = vtanh.f32 %v438_v17  ;;  %v446_v40 = vadd.f32 %v431_v29, %v406_v26  ;;  %v447_v43 = vadd.f32 %v431_v29, %v407_v30  ;;  %v448_v44 = vadd.f32 %v431_v29, %v408_v37 }
  0xa0   : > { %934 = vtanh.f32 %v439_v23  ;;  %v449_v46 = vadd.f32 %v431_v29, %v409_v41 }
  0xa1   : > { %936 = vtanh.f32 %v440_v25 }
  0xa2   : > { %938 = vtanh.f32 %v441_v28  ;;  %v436_v33 = vpop.permute.xlu1 %435 }
  0xa3   : > { %940 = vtanh.f32 %v446_v40  ;;  %v450_v49 = vadd.f32 %v436_v33, %v410_v32  ;;  %v451_v50 = vadd.f32 %v436_v33, %v411_v47  ;;  %v452_v52 = vadd.f32 %v436_v33, %v412_v48  ;;  %v491_v40 = vpop.permute.xlu0 %490 }
  0xa4   : > { %942 = vtanh.f32 %v447_v43  ;;  %v453_v53 = vadd.f32 %v436_v33, %v413_v34 }
  0xa5   : > { %v925_v51 = vpop.eup %924  ;;  %944 = vtanh.f32 %v448_v44 }
  0xa6   : > { %v927_v39 = vpop.eup %926  ;;  %946 = vtanh.f32 %v449_v46  ;;  %v486_v25 = vpop.permute.xlu1 %485 }
  0xa7   : > { %v929_v54 = vpop.eup %928  ;;  %948 = vtanh.f32 %v450_v49 }
  0xa8   : > { %v931_v55 = vpop.eup %930  ;;  %950 = vtanh.f32 %v451_v50 }
  0xa9   : > { %v933_v38 = vpop.eup %932  ;;  %952 = vtanh.f32 %v452_v52 }
  0xaa   : > { %v935_v42 = vpop.eup %934  ;;  %954 = vtanh.f32 %v453_v53  ;;  %v892_v56 = vpack.c.bf16 %v925_v51, %v933_v38  ;;  %v496_v45 = vpop.permute.xlu1 %495 }
  0xab   : > { %v937_v57 = vpop.eup %936  ;;  %v890_v58 = vpack.c.bf16 %v927_v39, %v935_v42 }
  0xac   : > { %v939_v59 = vpop.eup %938  ;;  %v900_v60 = vpack.c.bf16 %v929_v54, %v937_v57  ;;  %v712_v54 = vpop.permute.xlu0 %711 }
  0xad   : > { %v941_v61 = vpop.eup %940  ;;  %891 = vmatprep.subr.bf16.mxu0 %v890_v58  ;;  %v898_v62 = vpack.c.bf16 %v931_v55, %v939_v59 }
  0xae   : > { %v943_v63 = vpop.eup %942  ;;  %893 = vmatpush1.bf16.msra.mxu0 %v892_v56  ;;  %v717_v58 = vpop.permute.xlu1 %716 }
  0xaf   : > { %v945_v0 = vpop.eup %944  ;;  %899 = vmatprep.subr.bf16.mxu1 %v898_v62 }
  0xb0   : > { %v947_v1 = vpop.eup %946  ;;  %901 = vmatpush1.bf16.msra.mxu1 %v900_v60 }
  0xb1   : > { %v949_v2 = vpop.eup %948 }
  0xb2   : > { %v951_v3 = vpop.eup %950  ;;  %v896_v4 = vpack.c.bf16 %v949_v2, %v941_v61 }
  0xb3   : > { %v953_v5 = vpop.eup %952  ;;  %v894_v6 = vpack.c.bf16 %v951_v3, %v943_v63 }
  0xb4   : > { %v955_v7 = vpop.eup %954  ;;  %v904_v8 = vpack.c.bf16 %v953_v5, %v945_v0 }
  0xb5   : > { %895 = vmatprep.subr.bf16.mxu0 %v894_v6  ;;  %v902_v9 = vpack.c.bf16 %v955_v7, %v947_v1  ;;  %v722_v6 = vpop.permute.xlu0 %721 }
  0xb6   : > { %897 = vmatpush1.bf16.msra.mxu0 %v896_v4 }
  0xb7   : > { %903 = vmatprep.subr.bf16.mxu1 %v902_v9 }
  0xb8   : > { %905 = vmatpush1.bf16.msra.mxu1 %v904_v8 }
  0xb9   : > { %880 = vmatmul.mubr.msk.f32.vlgmr.msra.gmra.mrb[0].mxu0 %vm498_vm0, %v470_v10 }
  0xba   : > { %581 = vmatprep.mubr.f32.mxu0 %v998_v18 }
  0xbb   : > { %884 = vmatmul.mubr.msk.f32.vlgmr.msra.gmra.mrb[0].mxu1 %vm498_vm0, %v470_v10 }
  0xbc   : > { %670 = vmatprep.mubr.f32.mxu1 %v998_v18 }
  0xbd   : > { %881 = vmatmul.mubr.msk.f32.gmra.mrb[2].mxu0 %vm498_vm0, %v471_v11 }
  0xbe   : > { %587 = vmatprep.mubr.f32.mxu0 %v998_v18 }
  0xbf   : > { %885 = vmatmul.mubr.msk.f32.gmra.mrb[2].mxu1 %vm498_vm0, %v471_v11 }
  0xc0   : > { %676 = vmatprep.mubr.f32.mxu1 %v998_v18 }
  0xc1   : > { %882 = vmatmul.mubr.msk.f32.gmra.mrb[4].mxu0 %vm498_vm0, %v472_v12 }
  0xc2   : > { %593 = vmatprep.mubr.f32.mxu0 %v998_v18 }
  0xc3   : > { %886 = vmatmul.mubr.msk.f32.gmra.mrb[4].mxu1 %vm498_vm0, %v472_v12 }
  0xc4   : > { %682 = vmatprep.mubr.f32.mxu1 %v998_v18 }
  0xc5   : > { %883 = vmatmul.mubr.msk.f32.gmra.mrb[6].mxu0 %vm498_vm0, %v473_v13 }
  0xc7   : > { %887 = vmatmul.mubr.msk.f32.gmra.mrb[6].mxu1 %vm498_vm0, %v473_v13 }
 0x18c   : > { %v577_v15 = vpop.f32.mrb[0].mxu0 }
 0x18d   : > { %v578_v16 = vadd.f32 %v577_v15, %v481_v14  ;;  %v579_v17 = vpop.f32.mrb[1].mxu0 }
 0x18e   : > { %v666_v21 = vpop.f32.mrb[0].mxu1  ;;  %v580_v22 = vadd.f32 %v579_v17, %v481_v14 }
 0x18f   : > { %956 = vtanh.f32 %v578_v16  ;;  %v667_v23 = vadd.f32 %v666_v21, %v481_v14  ;;  %v668_v24 = vpop.f32.mrb[1].mxu1 }
 0x190   : > { %958 = vtanh.f32 %v580_v22  ;;  %v669_v26 = vadd.f32 %v668_v24, %v481_v14  ;;  %v583_v27 = vpop.f32.mrb[2].mxu0 }
 0x191   : > { %960 = vtanh.f32 %v667_v23  ;;  %v584_v28 = vadd.f32 %v583_v27, %v486_v25  ;;  %v585_v18 = vpop.f32.mrb[3].mxu0  ;;  %v727_v23 = vpop.permute.xlu1 %726 }
 0x192   : > { %962 = vtanh.f32 %v669_v26  ;;  %v672_v29 = vpop.f32.mrb[2].mxu1  ;;  %v586_v30 = vadd.f32 %v585_v18, %v486_v25 }
 0x193   : > { %964 = vtanh.f32 %v584_v28  ;;  %v673_v35 = vadd.f32 %v672_v29, %v486_v25  ;;  %v674_v37 = vpop.f32.mrb[3].mxu1 }
 0x194   : > { %966 = vtanh.f32 %v586_v30  ;;  %v675_v36 = vadd.f32 %v674_v37, %v486_v25  ;;  %v589_v41 = vpop.f32.mrb[4].mxu0 }
 0x195   : > { %968 = vtanh.f32 %v673_v35  ;;  %v590_v43 = vadd.f32 %v589_v41, %v491_v40  ;;  %v591_v31 = vpop.f32.mrb[5].mxu0 }
 0x196   : > { %970 = vtanh.f32 %v675_v36  ;;  %v678_v44 = vpop.f32.mrb[4].mxu1  ;;  %v592_v32 = vadd.f32 %v591_v31, %v491_v40 }
 0x197   : > { %972 = vtanh.f32 %v590_v43  ;;  %v679_v46 = vadd.f32 %v678_v44, %v491_v40  ;;  %v680_v33 = vpop.f32.mrb[5].mxu1 }
 0x198   : > { %974 = vtanh.f32 %v592_v32  ;;  %v681_v47 = vadd.f32 %v680_v33, %v491_v40  ;;  %v595_v48 = vpop.f32.mrb[6].mxu0 }
 0x199   : > { %v957_v49 = vpop.eup %956  ;;  %976 = vtanh.f32 %v679_v46  ;;  %v596_v34 = vadd.f32 %v595_v48, %v496_v45  ;;  %v597_v50 = vpop.f32.mrb[7].mxu0 }
 0x19a   : > { %v959_v51 = vpop.eup %958  ;;  %978 = vtanh.f32 %v681_v47  ;;  %v684_v52 = vpop.f32.mrb[6].mxu1  ;;  %v598_v39 = vadd.f32 %v597_v50, %v496_v45  ;;  %v729_v60 = vmul.f32 %v957_v49, %v712_v54  ;;  %v999_v50 = vmov 1966171168  }
 0x19b   : > { %v961_v53 = vpop.eup %960  ;;  %980 = vtanh.f32 %v596_v34  ;;  %v685_v55 = vadd.f32 %v684_v52, %v496_v45  ;;  %v686_v38 = vpop.f32.mrb[7].mxu1  ;;  %v730_v63 = vmul.f32 %v959_v51, %v712_v54  ;;  %v794_v51 = vunpack.c.l.s4 %v999_v50 }
 0x19c   : > { %v963_v42 = vpop.eup %962  ;;  %982 = vtanh.f32 %v598_v39  ;;  %v687_v56 = vadd.f32 %v686_v38, %v496_v45  ;;  %v731_v2 = vmul.f32 %v961_v53, %v712_v54 }
 0x19d   : > { %v965_v57 = vpop.eup %964  ;;  %984 = vtanh.f32 %v685_v55  ;;  %v732_v7 = vmul.f32 %v963_v42, %v712_v54 }
 0x19e   : > { %v967_v59 = vpop.eup %966  ;;  %v733_v61 = vmul.f32 %v965_v57, %v717_v58  ;;  %986 = vtanh.f32 %v687_v56  ;;  %v782_v56 = vstv %s781_s28 }
 0x19f   : > { %v969_v62 = vpop.eup %968  ;;  %v734_v0 = vmul.f32 %v967_v59, %v717_v58 }
 0x1a0   : > { %v971_v1 = vpop.eup %970  ;;  %v745_v3 = vadd.f32 %v733_v61, %v729_v60  ;;  %v735_v4 = vmul.f32 %v969_v62, %v717_v58 }
 0x1a1   : > { %v973_v5 = vpop.eup %972  ;;  %v754_v8 = vadd.f32 %v734_v0, %v730_v63  ;;  %v736_v9 = vmul.f32 %v971_v1, %v717_v58  ;;  %v795_v58 = vunpack.c.0.s8 %v794_v51 }
 0x1a2   : > { %v975_v10 = vpop.eup %974  ;;  %v763_v11 = vadd.f32 %v735_v4, %v731_v2  ;;  %v737_v12 = vmul.f32 %v973_v5, %v722_v6 }
 0x1a3   : > { %v977_v13 = vpop.eup %976  ;;  %v772_v14 = vadd.f32 %v736_v9, %v732_v7  ;;  %v738_v15 = vmul.f32 %v975_v10, %v722_v6 }
 0x1a4   : > { %v979_v16 = vpop.eup %978  ;;  %v746_v17 = vadd.f32 %v745_v3, %v737_v12  ;;  %v739_v21 = vmul.f32 %v977_v13, %v722_v6  ;;  %v798_v3 = vsub.s32 %v795_v58, %v1107_v20 }
 0x1a5   : > { %v981_v22 = vpop.eup %980  ;;  %v755_v24 = vadd.f32 %v754_v8, %v738_v15  ;;  %v740_v25 = vmul.f32 %v979_v16, %v722_v6 }
 0x1a6   : > { %v983_v26 = vpop.eup %982  ;;  %v764_v27 = vadd.f32 %v763_v11, %v739_v21  ;;  %v741_v28 = vmul.f32 %v981_v22, %v727_v23 }
 0x1a7   : > { %v985_v18 = vpop.eup %984  ;;  %v773_v29 = vadd.f32 %v772_v14, %v740_v25  ;;  %v742_v30 = vmul.f32 %v983_v26, %v727_v23 }
 0x1a8   : > { %v987_v35 = vpop.eup %986  ;;  %v747_v37 = vadd.f32 %v746_v17, %v741_v28  ;;  %v743_v40 = vmul.f32 %v985_v18, %v727_v23 }
 0x1a9   : > { %v756_v36 = vadd.f32 %v755_v24, %v742_v30  ;;  %v744_v41 = vmul.f32 %v987_v35, %v727_v23 }
 0x1aa   : > { %v748_v43 = vrot.slane %v747_v37, 4  ;;  %v765_v31 = vadd.f32 %v764_v27, %v743_v40 }
 0x1ab   : > { %v757_v44 = vrot.slane %v756_v36, 4  ;;  %v774_v32 = vadd.f32 %v773_v29, %v744_v41 }
 0x1ac   : > { %v749_v45 = vadd.f32 %v748_v43, %v747_v37  ;;  %v766_v46 = vrot.slane %v765_v31, 4 }
 0x1ad   : > { %v758_v33 = vadd.f32 %v757_v44, %v756_v36  ;;  %v775_v47 = vrot.slane %v774_v32, 4 }
 0x1ae   : > { %v750_v48 = vrot.slane %v749_v45, 2  ;;  %v767_v49 = vadd.f32 %v766_v46, %v765_v31 }
 0x1af   : > { %v759_v34 = vrot.slane %v758_v33, 2  ;;  %v776_v52 = vadd.f32 %v775_v47, %v774_v32 }
 0x1b0   : > { %v751_v39 = vadd.f32 %v750_v48, %v749_v45  ;;  %v768_v53 = vrot.slane %v767_v49, 2 }
 0x1b1   : > { %v760_v54 = vadd.f32 %v759_v34, %v758_v33  ;;  %v777_v55 = vrot.slane %v776_v52, 2 }
 0x1b2   : > { %v752_v38 = vrot.slane %v751_v39, 1  ;;  %v769_v42 = vadd.f32 %v768_v53, %v767_v49 }
 0x1b3   : > { %v761_v57 = vrot.slane %v760_v54, 1  ;;  %v778_v59 = vadd.f32 %v777_v55, %v776_v52 }
 0x1b4   : > { %v753_v60 = vadd.f32 %v752_v38, %v751_v39  ;;  %v770_v61 = vrot.slane %v769_v42, 1 }
 0x1b5   : > { %v762_v62 = vadd.f32 %v761_v57, %v760_v54  ;;  %v779_v63 = vrot.slane %v778_v59, 1 }
 0x1b6   : > { %v783_v0 = vadd.f32 %v782_v56, %v753_v60  ;;  %v771_v1 = vadd.f32 %v770_v61, %v769_v42 }
 0x1b7   : > { %v784_v2 = vadd.f32 %v782_v56, %v762_v62  ;;  %v780_v4 = vadd.f32 %v779_v63, %v778_v59 }
 0x1b8   : > { %v785_v5 = vadd.f32 %v782_v56, %v771_v1 }
 0x1b9   : > { %v791_v6 = vcombine.low %v783_v0, %v784_v2  ;;  %v786_v7 = vadd.f32 %v782_v56, %v780_v4 }
 0x1bb   : > { %v799_v8 = vrot.slane %v791_v6, %v798_v3  ;;  %v792_v9 = vcombine.low %v785_v5, %v786_v7 }
 0x1bd   : > { %v806_v10 = vrot.slane %v792_v9, %v798_v3 }
 0x1bf   : > { %v807_v11 = vcombine.low %v799_v8, %v806_v10 }
 0x1c1   : > { %v814_v12 = vrot.slane %v807_v11, %v798_v3 }
 0x1c3   : > { %820 = vst.msk [vmem:[%s279_s30] sm:$0xf] %vm818_vm1, %v814_v12 }
 0x1c4 PF: > { %s18_s26 = sadd.s32 1, %s994_s26  }
 0x1c5   : > { %p15_p4 = scmp.ge.s32.totalorder %s18_s26, 4  }
 0x1c7   :  { %17 = sbr.rel (!%p15_p4) target bundleno = 2 (0x2), region = 79 }

</bundles_post_ra>
